<compile_context>
chip_gen: v7x
topology: tpu7x:2x2x1
jax: 0.10.0
libtpu: 0.0.40
codegen_flags: <defaults>
</compile_context>

<pallas_src>
import jax
import jax.numpy as jnp
from jax.experimental import pallas as pl
from jax.experimental.pallas import tpu as pltpu


def _round_up(v, m):
    return ((v + m - 1) // m) * m


# ----------------------------------------------------------------------------
# Kernel
# ----------------------------------------------------------------------------
def _adaptive_value_kernel(
    x_ref,             # (TB, D)        bf16
    wf_ref, bf_ref,    # (D, H+H2p) bf16, (1, H+H2p) f32   fused [main | adapt] layer 1
    w2_ref, b2_ref,    # (H, H)    bf16,  (1, H)     f32   main layer 2
    w3_ref, b3_ref,    # (1, H)    f32,   (1, 1)     f32   main head (kept as a row)
    wa2_ref, ba2_ref,  # (H2p, H)  bf16,  (1, H)     f32   adaptation layer 2
    o_ref,             # (TB, H)        bf16
):
    H = w2_ref.shape[1]
    x = x_ref[...]

    # --- fused first layer for both branches: one MXU pass over shared x ---
    r = jnp.dot(x, wf_ref[...], preferred_element_type=jnp.float32) + bf_ref[...]
    r = jnp.maximum(r, 0.0)
    h1 = r[:, :H].astype(wf_ref.dtype)   # (TB, H)   main branch
    a1 = r[:, H:].astype(wf_ref.dtype)   # (TB, H2p) adapt branch (128-lane aligned)

    # --- main network: Linear(H,H) -> ReLU   (dropout = identity in eval) ---
    h2 = jnp.dot(h1, w2_ref[...], preferred_element_type=jnp.float32) + b2_ref[...]
    h2 = jnp.maximum(h2, 0.0)

    # --- main head Linear(H,1) as VPU mul + lane reduce (no N=1 MXU pass) ---
    main_out = jnp.sum(h2 * w3_ref[...], axis=-1, keepdims=True) + b3_ref[...]   # (TB, 1) f32

    # --- adaptation network: Linear(H2,H) -> Tanh (EUP) ---
    adapt = jnp.tanh(
        jnp.dot(a1, wa2_ref[...], preferred_element_type=jnp.float32) + ba2_ref[...]
    )  # (TB, H)

    # broadcast add: (TB,1) + (TB,H) -> (TB,H)
    o_ref[...] = (main_out + adapt).astype(o_ref.dtype)


# ----------------------------------------------------------------------------
# One-time parameter preparation (hoisted out of the forward path)
# ----------------------------------------------------------------------------
def prepare_params(params, weight_dtype=jnp.bfloat16):
    """Fuse/pad/cast raw (f32, (in,out)-layout) params once, before inference."""
    D, H = params["w1"].shape
    H2 = params["wa1"].shape[1]
    H2p = max(128, _round_up(H2, 128))          # lane-align the adapt branch
    pad = H2p - H2

    wa1 = jnp.pad(params["wa1"], ((0, 0), (0, pad)))   # zero cols -> relu(0)=0
    ba1 = jnp.pad(params["ba1"], ((0, 0), (0, pad)))
    wa2 = jnp.pad(params["wa2"], ((0, pad), (0, 0)))   # zero rows -> contribute 0

    return {
        "H": H, "H2": H2, "H2p": H2p, "D": D,
        # fused first layer [main | adapt]
        "w_first": jnp.concatenate([params["w1"], wa1], axis=1).astype(weight_dtype),
        "b_first": jnp.concatenate([params["b1"], ba1], axis=1).astype(jnp.float32),
        # main layer 2 + head
        "w2": params["w2"].astype(weight_dtype),
        "b2": params["b2"].astype(jnp.float32),
        "w3_row": params["w3"].reshape(1, H).astype(jnp.float32),
        "b3": params["b3"].astype(jnp.float32),
        # adaptation layer 2
        "wa2": wa2.astype(weight_dtype),
        "ba2": params["ba2"].astype(jnp.float32),
    }


# ----------------------------------------------------------------------------
# Forward wrapper
# ----------------------------------------------------------------------------
def adaptive_value_forward(x, prep, *, block_batch=2048, min_parallel_blocks=2):
    """x: (B, D) (any float dtype; cast to bf16).  Returns (B, H) bfloat16."""
    B, D = x.shape
    H, H2p = prep["H"], prep["H2p"]
    x = x.astype(jnp.bfloat16)

    # --- batch tile: big (amortize ~0.35us/step on v5e/v6e single TC), but
    #     keep >= min_parallel_blocks grid steps so v7x megacore splits it.
    tb = min(block_batch, B)
    if min_parallel_blocks > 1 and B > 8:
        tb = min(tb, _round_up(pl.cdiv(B, min_parallel_blocks), 8))
    if tb < B:
        tb = max(8, (tb // 8) * 8)              # (8,128) sublane rule when tiling
    grid = (pl.cdiv(B, tb),)

    weights = (
        prep["w_first"], prep["b_first"],
        prep["w2"], prep["b2"],
        prep["w3_row"], prep["b3"],
        prep["wa2"], prep["ba2"],
    )

    # x/out tiled along batch (double-buffered); weights resident + single-buffered.
    in_specs = [pl.BlockSpec((tb, D), lambda i: (i, 0))]
    in_specs += [
        pl.BlockSpec(w.shape, lambda i: (0, 0), pipeline_mode=pl.Buffered(1))
        for w in weights
    ]
    out_spec = pl.BlockSpec((tb, H), lambda i: (i, 0))

    weight_bytes = sum(int(w.size) * w.dtype.itemsize for w in weights)

    # VMEM footprint estimate (bytes): resident weights + double-buffered x/out
    # (bf16) + f32 intermediates; used to set an explicit scoped-VMEM limit.
    est = (
        weight_bytes
        + 2 * 2 * (tb * D + tb * H)
        + 4 * tb * ((H + H2p) + H + H + 1)
    )
    vmem_limit = int(min(64 << 20, max(2 * est, 16 << 20)))

    cost = pl.CostEstimate(
        flops=2 * B * (D * (H + H2p) + H * H + H2p * H + H),
        transcendentals=B * H,                   # tanh
        bytes_accessed=2 * B * (D + H) + weight_bytes,
    )

    return pl.pallas_call(
        _adaptive_value_kernel,
        out_shape=jax.ShapeDtypeStruct((B, H), jnp.bfloat16),
        grid=grid,
        in_specs=in_specs,
        out_specs=out_spec,
        compiler_params=pltpu.CompilerParams(
            dimension_semantics=("parallel",),    # megacore split on v7x
            vmem_limit_bytes=vmem_limit,
        ),
        cost_estimate=cost,
    )(x, *weights)


# ----------------------------------------------------------------------------
# Init + reference (for the self-test)
# ----------------------------------------------------------------------------
def xavier_uniform(key, fan_in, fan_out, dtype=jnp.float32):
    # matches nn.init.xavier_uniform_ for a (fan_out, fan_in) torch weight,
    # stored transposed as (fan_in, fan_out).
    limit = jnp.sqrt(6.0 / (fan_in + fan_out))
    return jax.random.uniform(key, (fan_in, fan_out), dtype, -limit, limit)


def init_params(key, input_dim, hidden_dim):
    h2 = hidden_dim // 2
    ks = jax.random.split(key, 5)
    return {
        # main network
        "w1": xavier_uniform(ks[0], input_dim, hidden_dim),
        "b1": jnp.zeros((1, hidden_dim), jnp.float32),
        "w2": xavier_uniform(ks[1], hidden_dim, hidden_dim),
        "b2": jnp.zeros((1, hidden_dim), jnp.float32),
        "w3": xavier_uniform(ks[2], hidden_dim, 1),
        "b3": jnp.zeros((1, 1), jnp.float32),
        # adaptation network
        "wa1": xavier_uniform(ks[3], input_dim, h2),
        "ba1": jnp.zeros((1, h2), jnp.float32),
        "wa2": xavier_uniform(ks[4], h2, hidden_dim),
        "ba2": jnp.zeros((1, hidden_dim), jnp.float32),
    }


def reference_forward(x, prep):
    """bf16-consistent reference: same bf16 weights/activation casts, f32 math."""
    pr = jax.lax.Precision.HIGHEST
    f32, bf16 = jnp.float32, jnp.bfloat16
    H = prep["H"]
    xb = x.astype(bf16).astype(f32)
    r = jnp.maximum(jnp.dot(xb, prep["w_first"].astype(f32), precision=pr) + prep["b_first"], 0.0)
    h1 = r[:, :H].astype(bf16).astype(f32)
    a1 = r[:, H:].astype(bf16).astype(f32)
    h2 = jnp.maximum(jnp.dot(h1, prep["w2"].astype(f32), precision=pr) + prep["b2"], 0.0)
    main = jnp.sum(h2 * prep["w3_row"], axis=-1, keepdims=True) + prep["b3"]
    adapt = jnp.tanh(jnp.dot(a1, prep["wa2"].astype(f32), precision=pr) + prep["ba2"])
    return main + adapt


if __name__ == "__main__":
    key = jax.random.PRNGKey(0)
    k_x, k_p = jax.random.split(key)

    # Small but representative shapes: H multiple of 128 keeps stores lane-dense;
    # batch of 64 is split into 2 "parallel" grid steps (v7x megacore friendly).
    batch = 64
    input_dim = 64
    hidden_dim = 128

    x = jax.random.normal(k_x, (batch, input_dim), jnp.float32)
    params = init_params(k_p, input_dim, hidden_dim)
    prep = prepare_params(params)          # one-time fuse/pad/cast (hoisted)

    out = adaptive_value_forward(x, prep)
    out = jax.block_until_ready(out)

    ref = reference_forward(x, prep)
    assert out.shape == (batch, hidden_dim)
    assert out.dtype == jnp.bfloat16
    # accuracy budget: bf16 output rounding + accumulation-order differences.
    assert jnp.allclose(out.astype(jnp.float32), ref, atol=2e-2, rtol=2e-2), \
        "mismatch vs. reference"

    print("KERNEL_OK")
</pallas_src>

<mosaic_0001>
module attributes {stable_mosaic.version = 11 : i64} {
  func.func @_adaptive_value_kernel(%arg0: i32, %arg1: memref<32x64xbf16, #tpu.memory_space<vmem>>, %arg2: memref<64x256xbf16, #tpu.memory_space<vmem>>, %arg3: memref<1x256xf32, #tpu.memory_space<vmem>>, %arg4: memref<128x128xbf16, #tpu.memory_space<vmem>>, %arg5: memref<1x128xf32, #tpu.memory_space<vmem>>, %arg6: memref<1x128xf32, #tpu.memory_space<vmem>>, %arg7: memref<1x1xf32, #tpu.memory_space<vmem>>, %arg8: memref<128x128xbf16, #tpu.memory_space<vmem>>, %arg9: memref<1x128xf32, #tpu.memory_space<vmem>>, %arg10: memref<32x128xbf16, #tpu.memory_space<vmem>>) attributes {dimension_semantics = [#tpu.dimension_semantics<parallel>], iteration_bounds = array<i64: 2>, scalar_prefetch = 0 : i64, scratch_operands = 0 : i64, tpu.core_type = #tpu.core_type<tc>, window_params = [{transform_indices = @transform_0, window_bounds = array<i64: 32, 64>}, {pipeline_mode = #tpu.pipeline_mode<synchronous>, transform_indices = @transform_1, window_bounds = array<i64: 64, 256>}, {pipeline_mode = #tpu.pipeline_mode<synchronous>, transform_indices = @transform_2, window_bounds = array<i64: 1, 256>}, {pipeline_mode = #tpu.pipeline_mode<synchronous>, transform_indices = @transform_3, window_bounds = array<i64: 128, 128>}, {pipeline_mode = #tpu.pipeline_mode<synchronous>, transform_indices = @transform_4, window_bounds = array<i64: 1, 128>}, {pipeline_mode = #tpu.pipeline_mode<synchronous>, transform_indices = @transform_5, window_bounds = array<i64: 1, 128>}, {pipeline_mode = #tpu.pipeline_mode<synchronous>, transform_indices = @transform_6, window_bounds = array<i64: 1, 1>}, {pipeline_mode = #tpu.pipeline_mode<synchronous>, transform_indices = @transform_7, window_bounds = array<i64: 128, 128>}, {pipeline_mode = #tpu.pipeline_mode<synchronous>, transform_indices = @transform_8, window_bounds = array<i64: 1, 128>}, {transform_indices = @transform_9, window_bounds = array<i64: 32, 128>}]} {
    %c0 = arith.constant 0 : index
    %c0_0 = arith.constant 0 : index
    %0 = vector.load %arg1[%c0, %c0_0] : memref<32x64xbf16, #tpu.memory_space<vmem>>, vector<32x64xbf16>
    %c0_1 = arith.constant 0 : index
    %c0_2 = arith.constant 0 : index
    %1 = vector.load %arg2[%c0_1, %c0_2] : memref<64x256xbf16, #tpu.memory_space<vmem>>, vector<64x256xbf16>
    %cst = arith.constant dense<0.000000e+00> : vector<32x256xf32>
    %2 = tpu.matmul %0, %1, %cst {dimension_numbers = #tpu.dot_dimension_numbers<[1], [0], [0], [1], [0, 0, 1, 1], [], []>} : vector<32x64xbf16>, vector<64x256xbf16>, vector<32x256xf32> -> vector<32x256xf32>
    %c0_3 = arith.constant 0 : index
    %c0_4 = arith.constant 0 : index
    %3 = vector.load %arg3[%c0_3, %c0_4] : memref<1x256xf32, #tpu.memory_space<vmem>>, vector<1x256xf32>
    %4 = vector.broadcast %3 : vector<1x256xf32> to vector<32x256xf32>
    %5 = arith.addf %2, %4 : vector<32x256xf32>
    %cst_5 = arith.constant 0.000000e+00 : f32
    %6 = vector.broadcast %cst_5 : f32 to vector<32x256xf32>
    %7 = arith.maximumf %5, %6 : vector<32x256xf32>
    %8 = vector.extract_strided_slice %7 {offsets = [0, 0], sizes = [32, 128], strides = [1, 1]} : vector<32x256xf32> to vector<32x128xf32>
    %9 = arith.truncf %8 : vector<32x128xf32> to vector<32x128xbf16>
    %10 = vector.extract_strided_slice %7 {offsets = [0, 128], sizes = [32, 128], strides = [1, 1]} : vector<32x256xf32> to vector<32x128xf32>
    %11 = arith.truncf %10 : vector<32x128xf32> to vector<32x128xbf16>
    %c0_6 = arith.constant 0 : index
    %c0_7 = arith.constant 0 : index
    %12 = vector.load %arg4[%c0_6, %c0_7] : memref<128x128xbf16, #tpu.memory_space<vmem>>, vector<128x128xbf16>
    %cst_8 = arith.constant dense<0.000000e+00> : vector<32x128xf32>
    %13 = tpu.matmul %9, %12, %cst_8 {dimension_numbers = #tpu.dot_dimension_numbers<[1], [0], [0], [1], [0, 0, 1, 1], [], []>} : vector<32x128xbf16>, vector<128x128xbf16>, vector<32x128xf32> -> vector<32x128xf32>
    %c0_9 = arith.constant 0 : index
    %c0_10 = arith.constant 0 : index
    %14 = vector.load %arg5[%c0_9, %c0_10] : memref<1x128xf32, #tpu.memory_space<vmem>>, vector<1x128xf32>
    %15 = vector.broadcast %14 : vector<1x128xf32> to vector<32x128xf32>
    %16 = arith.addf %13, %15 : vector<32x128xf32>
    %cst_11 = arith.constant 0.000000e+00 : f32
    %17 = vector.broadcast %cst_11 : f32 to vector<32x128xf32>
    %18 = arith.maximumf %16, %17 : vector<32x128xf32>
    %c0_12 = arith.constant 0 : index
    %c0_13 = arith.constant 0 : index
    %19 = vector.load %arg6[%c0_12, %c0_13] : memref<1x128xf32, #tpu.memory_space<vmem>>, vector<1x128xf32>
    %20 = vector.broadcast %19 : vector<1x128xf32> to vector<32x128xf32>
    %21 = arith.mulf %18, %20 : vector<32x128xf32>
    %cst_14 = arith.constant dense<0.000000e+00> : vector<32xf32>
    %22 = vector.multi_reduction <add>, %21, %cst_14 [1] : vector<32x128xf32> to vector<32xf32>
    %23 = vector.shape_cast %22 : vector<32xf32> to vector<32x1xf32>
    %c0_15 = arith.constant 0 : index
    %c0_16 = arith.constant 0 : index
    %24 = vector.load %arg7[%c0_15, %c0_16] : memref<1x1xf32, #tpu.memory_space<vmem>>, vector<1x1xf32>
    %25 = vector.broadcast %24 : vector<1x1xf32> to vector<32x1xf32>
    %26 = arith.addf %23, %25 : vector<32x1xf32>
    %c0_17 = arith.constant 0 : index
    %c0_18 = arith.constant 0 : index
    %27 = vector.load %arg8[%c0_17, %c0_18] : memref<128x128xbf16, #tpu.memory_space<vmem>>, vector<128x128xbf16>
    %cst_19 = arith.constant dense<0.000000e+00> : vector<32x128xf32>
    %28 = tpu.matmul %11, %27, %cst_19 {dimension_numbers = #tpu.dot_dimension_numbers<[1], [0], [0], [1], [0, 0, 1, 1], [], []>} : vector<32x128xbf16>, vector<128x128xbf16>, vector<32x128xf32> -> vector<32x128xf32>
    %c0_20 = arith.constant 0 : index
    %c0_21 = arith.constant 0 : index
    %29 = vector.load %arg9[%c0_20, %c0_21] : memref<1x128xf32, #tpu.memory_space<vmem>>, vector<1x128xf32>
    %30 = vector.broadcast %29 : vector<1x128xf32> to vector<32x128xf32>
    %31 = arith.addf %28, %30 : vector<32x128xf32>
    %32 = math.tanh %31 : vector<32x128xf32>
    %33 = vector.broadcast %26 : vector<32x1xf32> to vector<32x128xf32>
    %34 = arith.addf %33, %32 : vector<32x128xf32>
    %35 = arith.truncf %34 : vector<32x128xf32> to vector<32x128xbf16>
    %c0_22 = arith.constant 0 : index
    %c0_23 = arith.constant 0 : index
    %36 = vector.load %arg10[%c0_22, %c0_23] : memref<32x128xbf16, #tpu.memory_space<vmem>>, vector<32x128xbf16>
    tpu.vector_store %arg10[%c0_22, %c0_23], %35 {strides = array<i32>} : memref<32x128xbf16, #tpu.memory_space<vmem>>, vector<32x128xbf16>,
    return
  }
  func.func @transform_0(%arg0: i32) -> (i32, i32) {
    %c0_i32 = arith.constant 0 : i32
    %c0_i32_0 = arith.constant 0 : i32
    return %arg0, %c0_i32 : i32, i32
  }
  func.func @transform_1(%arg0: i32) -> (i32, i32) {
    %c0_i32 = arith.constant 0 : i32
    %c0_i32_0 = arith.constant 0 : i32
    %c0_i32_1 = arith.constant 0 : i32
    return %c0_i32, %c0_i32_0 : i32, i32
  }
  func.func @transform_2(%arg0: i32) -> (i32, i32) {
    %c0_i32 = arith.constant 0 : i32
    %c0_i32_0 = arith.constant 0 : i32
    %c0_i32_1 = arith.constant 0 : i32
    return %c0_i32, %c0_i32_0 : i32, i32
  }
  func.func @transform_3(%arg0: i32) -> (i32, i32) {
    %c0_i32 = arith.constant 0 : i32
    %c0_i32_0 = arith.constant 0 : i32
    %c0_i32_1 = arith.constant 0 : i32
    return %c0_i32, %c0_i32_0 : i32, i32
  }
  func.func @transform_4(%arg0: i32) -> (i32, i32) {
    %c0_i32 = arith.constant 0 : i32
    %c0_i32_0 = arith.constant 0 : i32
    %c0_i32_1 = arith.constant 0 : i32
    return %c0_i32, %c0_i32_0 : i32, i32
  }
  func.func @transform_5(%arg0: i32) -> (i32, i32) {
    %c0_i32 = arith.constant 0 : i32
    %c0_i32_0 = arith.constant 0 : i32
    %c0_i32_1 = arith.constant 0 : i32
    return %c0_i32, %c0_i32_0 : i32, i32
  }
  func.func @transform_6(%arg0: i32) -> (i32, i32) {
    %c0_i32 = arith.constant 0 : i32
    %c0_i32_0 = arith.constant 0 : i32
    %c0_i32_1 = arith.constant 0 : i32
    return %c0_i32, %c0_i32_0 : i32, i32
  }
  func.func @transform_7(%arg0: i32) -> (i32, i32) {
    %c0_i32 = arith.constant 0 : i32
    %c0_i32_0 = arith.constant 0 : i32
    %c0_i32_1 = arith.constant 0 : i32
    return %c0_i32, %c0_i32_0 : i32, i32
  }
  func.func @transform_8(%arg0: i32) -> (i32, i32) {
    %c0_i32 = arith.constant 0 : i32
    %c0_i32_0 = arith.constant 0 : i32
    %c0_i32_1 = arith.constant 0 : i32
    return %c0_i32, %c0_i32_0 : i32, i32
  }
  func.func @transform_9(%arg0: i32) -> (i32, i32) {
    %c0_i32 = arith.constant 0 : i32
    %c0_i32_0 = arith.constant 0 : i32
    return %arg0, %c0_i32 : i32, i32
  }
}

</mosaic_0001>

<bundles_post_ra>
// kernel: tpu_custom_call.1
= control target key start
LH: loop header
LB: loop body
LE: loop exit
PB: predicated region body
PF: predicated region fallthrough
CT: control target
= control target key end

     0   :  { %s1783_s0 = inlined_call_operand.hbm [shape: bf16[64,64], index: 0, kind: input, shape index: {}]   ;;  %s1784_s1 = inlined_call_operand.hbm [shape: bf16[64,256], index: 1, kind: input, shape index: {}]   ;;  %s1785_s2 = inlined_call_operand.vmem [shape: f32[1,256], index: 2, kind: input, shape index: {}]   ;;  %s1786_s3 = inlined_call_operand.hbm [shape: bf16[128,128], index: 3, kind: input, shape index: {}]   ;;  %s1787_s4 = inlined_call_operand.vmem [shape: f32[1,128], index: 4, kind: input, shape index: {}]   ;;  %s1788_s5 = inlined_call_operand.vmem [shape: f32[1,128], index: 5, kind: input, shape index: {}]   ;;  %s1789_s6 = inlined_call_operand.<no memory space> [shape: f32[1,1], index: 6, kind: input, shape index: {}]   ;;  %s1790_s7 = inlined_call_operand.hbm [shape: bf16[128,128], index: 7, kind: input, shape index: {}]   ;;  %s1791_s8 = inlined_call_operand.vmem [shape: f32[1,128], index: 8, kind: input, shape index: {}]   ;;  %s1792_s9 = inlined_call_operand.hbm [shape: bf16[64,128], index: 9, kind: output, shape index: {}]  }
   0x1   :  { %1798 = sst [smem:[#allocation18_spill]] %s1784_s1  ;;  %v14_v0 = vstv %s1789_s6 }
   0x2   :  { %15 = vst [vmem:[#allocation2] sm:$0x1] %v14_v0 }
   0x3   :  { %16 = vsyncpa [#allocation4], 0 }
   0x4   :  { %18 = vsyncpa [#allocation4 + $0x1], 0 }
   0x5   :  { %19 = vsyncpa [#allocation7], 0 }
   0x6   :  { %20 = vsyncpa [#allocation10], 0 }
   0x7   :  { %21 = vsyncpa [#allocation5], 0 }
   0x8   :  { %23 = vsyncpa [#allocation5 + $0x1], 0  ;;  %s1496_s11 = smov 0   ;;  %s1498_s12 = smov 0  }
   0x9   :  { %s1500_s13 = smov 0   ;;  %s1502_s14 = smov 0  }
   0xa LB: > { %1799 = sst [smem:[#allocation16_spill]] %s1417_s11  ;;  %s1517_s6 = sadd.s32 4294967295, %s1429_s14   ;;  %s1429_s14 = sphi %s1502_s14, %s1823_s14   ;;  %s1425_s13 = sphi %s1500_s13, %s1822_s13   ;;  %s1421_s12 = sphi %s1498_s12, %s1821_s12   ;;  %s1417_s11 = sphi %s1496_s11, %s1820_s11  }
   0xb   : > { %s984_s15 = sadd.s32 4294967294, %s1429_s14   ;;  %p49_p0 = scmp.ne.s32.totalorder %s1421_s12, %s1417_s11 }
   0xc   : > { %p1793_p1 = scmp.eq.s32.totalorder %s1517_s6, 0  ;;  %p247_p3 = scmp.eq.s32.totalorder %s984_s15, 1 }
   0xd   : > { %p985_p5 = scmp.ge.s32.totalorder %s1429_s14, 1  ;;  %p254_p7 = scmp.lt.s32.totalorder %s1429_s14, 3 }
   0xe   : > { %p1526_p4 = por %p1793_p1, %p49_p0  ;;  %p1531_p6 = por %p247_p3, %p49_p0 }
   0xf   : > { %p1536_p8 = pnand %p985_p5, %p254_p7  ;;  %s1431_s19 = smov [#allocation6]  }
  0x10   : > { %s1800_s16 = scalar_select %p1526_p4, 1, 0 }
  0x11   : > { %s1801_s17 = scalar_select %p1531_p6, 1, 0 }
  0x12   : > { %s1803_s18 = scalar_select %p1536_p8, 1, 0 }
  0x13   : > { %1802 = sst [smem:[#allocation17_spill]] %s1801_s17  ;;  %s266_s20 = sshll.u32 %s1431_s19, 4  ;;  %s1540_s20 = int_to_ptr.vmem [resolvable:$true] %s266_s20 }
  0x14   : > { %p1133_p9 = pneg %p1536_p8  ;;  %s1432_s22 = smov [#allocation8]  }
  0x15   : > { %s282_s23 = sshll.u32 %s1432_s22, 4  ;;  %s1805_s1 = sld [smem:[#allocation18_spill]]  ;;  %s1551_s23 = int_to_ptr.vmem [resolvable:$true] %s282_s23 }
  0x16   : > { %p1547_p11 = pnand %p1133_p9, %p1793_p1 }
  0x18   : > { %p1561_p13 = pneg %p1547_p11 }
  0x1b   : > { %s1241_s26 = scalar_lea.hbm %s1805_s1, 1024 }
  0x1c   : > { %p1242_p12 = scmp.ne.s32.totalorder %s1805_s1, %s1241_s26  ;;  %p1248_p5 = scmp.lt.u32.totalorder %s1241_s26, %s1805_s1 }
  0x1e   : > { %p1244_p0 = pnand %p1561_p13, %p1242_p12 }
  0x20   : > { %p1245_p3 = pneg %p1244_p0 }
  0x22   : > { %p1250_p7 = pnand %p1248_p5, %p1245_p3 }
  0x24   : > { %1253 = shalt.err (!%p1250_p7)
}
  0x25   : > { %s1254_s15 = scalar_lea.vmem %s1540_s20, 1024  ;;  %p1262_p2 = scmp.lt.s32.totalorder %s1540_s20, %s1540_s20 }
  0x26   : > { %p1255_p9 = scmp.ne.s32.totalorder %s1540_s20, %s1254_s15  ;;  %p1263_p6 = scmp.lt.s32.totalorder %s1254_s15, %s1254_s15 }
  0x28   : > { %p1257_p10 = pnand %p1255_p9, %p1561_p13  ;;  %p1264_p12 = por %p1263_p6, %p1262_p2 }
  0x2a   : > { %p1258_p1 = pneg %p1257_p10 }
  0x2c   : > { %p1265_p0 = pnand %p1264_p12, %p1258_p1 }
  0x2e   : > { %1268 = shalt.err (!%p1265_p0)
}
  0x2f   : > { %s1433_s19 = smov 128   ;;  %s1434_s22 = smov 8  }
  0x30   : > { %1136 = dma.hbm_to_vmem [thread:$0]  (!%p1547_p11), %s1805_s1, 1024, %s1540_s20, [#allocation7], %s1433_s19, %s1433_s19, %s1434_s22  }
  0x31   : > { %s1269_s28 = scalar_lea.hbm %s1786_s3, 1024 }
  0x32   : > { %p1270_p2 = scmp.ne.s32.totalorder %s1786_s3, %s1269_s28  ;;  %p1276_p10 = scmp.lt.u32.totalorder %s1269_s28, %s1786_s3 }
  0x34   : > { %p1272_p1 = pnand %p1270_p2, %p1561_p13 }
  0x36   : > { %p1273_p6 = pneg %p1272_p1 }
  0x38   : > { %p1278_p3 = pnand %p1276_p10, %p1273_p6 }
  0x3a   : > { %1281 = shalt.err (!%p1278_p3)
}
  0x3b   : > { %s1282_s20 = scalar_lea.vmem %s1551_s23, 1024  ;;  %p1290_p12 = scmp.lt.s32.totalorder %s1551_s23, %s1551_s23 }
  0x3c   : > { %p1283_p5 = scmp.ne.s32.totalorder %s1551_s23, %s1282_s20  ;;  %p1291_p0 = scmp.lt.s32.totalorder %s1282_s20, %s1282_s20 }
  0x3e   : > { %p1285_p7 = pnand %p1283_p5, %p1561_p13  ;;  %p1292_p2 = por %p1291_p0, %p1290_p12 }
  0x40   : > { %p1286_p9 = pneg %p1285_p7 }
  0x42   : > { %p1293_p1 = pnand %p1292_p2, %p1286_p9 }
  0x44   : > { %1296 = shalt.err (!%p1293_p1)
}
  0x45   : > { %s1435_s19 = smov 64   ;;  %s1436_s17 = smov 4  }
  0x46   : > { %1139 = dma.hbm_to_vmem [thread:$0]  (!%p1547_p11), %s1786_s3, 1024, %s1551_s23, [#allocation7], %s1435_s19, %s1435_s19, %s1436_s17  }
  0x47   : > { %s1437_s25 = smov [#allocation9]   ;;  %s1609_s27 = sadd.s32 1, %s1429_s14  }
  0x48   : > { %s304_s26 = sshll.u32 %s1437_s25, 4  ;;  %s1297_s10 = scalar_lea.hbm %s1790_s7, 1024  ;;  %s305_s26 = int_to_ptr.vmem [resolvable:$true] %s304_s26 }
  0x49   : > { %p1298_p6 = scmp.ne.s32.totalorder %s1790_s7, %s1297_s10  ;;  %p1304_p5 = scmp.lt.u32.totalorder %s1297_s10, %s1790_s7 }
  0x4b   : > { %p1300_p10 = pnand %p1298_p6, %p1561_p13 }
  0x4d   : > { %p1301_p3 = pneg %p1300_p10 }
  0x4f   : > { %p1306_p7 = pnand %p1304_p5, %p1301_p3 }
  0x51   : > { %1309 = shalt.err (!%p1306_p7)
}
  0x52   : > { %s1310_s23 = scalar_lea.vmem %s305_s26, 1024  ;;  %p1318_p2 = scmp.lt.s32.totalorder %s305_s26, %s305_s26 }
  0x53   : > { %p1311_p9 = scmp.ne.s32.totalorder %s305_s26, %s1310_s23  ;;  %p1319_p1 = scmp.lt.s32.totalorder %s1310_s23, %s1310_s23 }
  0x55   : > { %p1313_p12 = pnand %p1311_p9, %p1561_p13  ;;  %p1320_p4 = por %p1319_p1, %p1318_p2 }
  0x57   : > { %p1314_p0 = pneg %p1313_p12 }
  0x59   : > { %p1321_p8 = pnand %p1320_p4, %p1314_p0 }
  0x5b   : > { %1324 = shalt.err (!%p1321_p8)
}
  0x5c   : > { %1142 = dma.hbm_to_vmem [thread:$0]  (!%p1547_p11), %s1790_s7, 1024, %s305_s26, [#allocation10], %s1435_s19, %s1435_s19, %s1436_s17  }
  0x5d   : > { %s33_s29 = ssub.s32 %s1429_s14, %s1609_s27  ;;  %s36_s21 = sadd.s32 1, %s1425_s13 }
  0x5e   : > { %p34_p4 = scmp.eq.s32.totalorder %s33_s29, 0  ;;  %p43_p8 = scmp.ne.s32.totalorder %s1425_s13, %s1421_s12 }
  0x5f   : > { %p44_p13 = scmp.eq.s32.totalorder %s1429_s14, 0  ;;  %p1154_p6 = scmp.lt.s32.totalorder %s1429_s14, 2 }
  0x60   : > { %s1640_s22 = scalar_select %p34_p4, %s1425_s13, %s36_s21  }
  0x61   : > { %p45_p10 = por %p44_p13, %p43_p8  ;;  %p1807_p3 = scmp.eq.s32.totalorder %s1517_s6, 1 }
  0x62   : > { %s321_s25 = sand.u32 1, %s1425_s13   ;;  %s1040_s28 = sshll.u32 %s1429_s14, 8 }
  0x63   : > { %p1644_p5 = por %p1807_p3, %p43_p8  ;;  %s990_s30 = sshll.u32 %s321_s25, 4 }
  0x64   : > { %s1653_s26 = scalar_lea.hbm %s1783_s0, %s1040_s28  ;;  %s325_s20 = scalar_lea.vmem [#allocation3], %s990_s30 }
  0x65   : > { %s332_s23 = sshll.u32 %s325_s20, 4  ;;  %p1655_p11 = pnand %p1154_p6, %p45_p10  ;;  %s1659_s23 = int_to_ptr.vmem [resolvable:$true] %s332_s23 }
  0x66   : > { %s1661_s11 = scalar_lea.sflag [#allocation4], %s321_s25  ;;  %s1325_s29 = scalar_lea.hbm %s1653_s26, 256 }
  0x67   : > { %p1326_p7 = scmp.ne.s32.totalorder %s1653_s26, %s1325_s29  ;;  %p1327_p9 = pneg %p1655_p11 }
  0x68   : > { %s1330_s30 = scalar_lea.hbm %s1783_s0, 512  ;;  %p1331_p2 = scmp.lt.u32.totalorder %s1653_s26, %s1783_s0 }
  0x69   : > { %p1328_p12 = pnand %p1327_p9, %p1326_p7  ;;  %p1332_p1 = scmp.lt.u32.totalorder %s1330_s30, %s1325_s29 }
  0x6a   : > { %p1334_p8 = scmp.lt.u32.totalorder %s1325_s29, %s1653_s26 }
  0x6b   : > { %p1329_p0 = pneg %p1328_p12  ;;  %p1333_p4 = por %p1332_p1, %p1331_p2 }
  0x6d   : > { %p1335_p13 = por %p1334_p8, %p1333_p4 }
  0x6f   : > { %p1336_p6 = pnand %p1335_p13, %p1329_p0 }
  0x71   : > { %1339 = shalt.err (!%p1336_p6)
}
  0x72   : > { %s1340_s25 = scalar_lea.vmem %s1659_s23, 256  ;;  %s1438_s20 = smov [#allocation3]  }
  0x73   : > { %p1341_p10 = scmp.ne.s32.totalorder %s1659_s23, %s1340_s25  ;;  %s1345_s21 = sshll.u32 %s1438_s20, 4  ;;  %s1346_s21 = int_to_ptr.vmem [resolvable:$false] %s1345_s21 }
  0x74   : > { %s1347_s28 = scalar_lea.vmem %s1346_s21, 512  ;;  %p1348_p12 = scmp.lt.s32.totalorder %s1659_s23, %s1346_s21 }
  0x75   : > { %p1343_p3 = pnand %p1341_p10, %p1327_p9  ;;  %p1349_p2 = scmp.lt.s32.totalorder %s1347_s28, %s1340_s25 }
  0x77   : > { %p1344_p7 = pneg %p1343_p3  ;;  %p1350_p1 = por %p1349_p2, %p1348_p12 }
  0x79   : > { %p1351_p4 = pnand %p1350_p1, %p1344_p7 }
  0x7b   : > { %1354 = shalt.err (!%p1351_p4)
}
  0x7c   : > { %1146 = dma.hbm_to_vmem [thread:$0]  (!%p1655_p11), %s1653_s26, 256, %s1659_s23, %s1661_s11, %s1435_s19, %s1435_s19, %s1436_s17  }
  0x7d   : > { %p1810_p9 = scmp.ne.s32.totalorder %s1803_s18, 0 }
  0x7e   : > { %s1695_s29 = sand.u32 (!%p1810_p9), 1, %s1421_s12   ;;  %p1811_p0 = scmp.ne.s32.totalorder (!%p1810_p9), %s1800_s16, 0 }
  0x7f   : > { %344 = sbr.rel (%p1810_p9) target bundleno = 906 (0x38a), region = 56  ;;  %s994_s30 = sshll.u32 (!%p1810_p9), %s1695_s29, 4 }
  0x80   : > { %s347_s10 = scalar_lea.sflag (!%p1810_p9), [#allocation4], %s1695_s29  ;;  %s1701_s1 = scalar_lea.vmem (!%p1810_p9), [#allocation3], %s994_s30 }
  0x86   : > { %1400 = dma.done.wait (%p1811_p0), %s347_s10, 256  }
  0x87   : > { %1402 = vsyncadd (%p1811_p0), %s347_s10, 4294967040  ;;  %p1812_p11 = scmp.eq.s32.totalorder %s1517_s6, 0 }
  0x89   : > { %1404 = dma.done.wait (%p1812_p11), [#allocation7], 2048   ;;  %p1813_p8 = pmov %p1812_p11 }
  0x8b   : > { %1406 = vsyncadd (%p1813_p8), [#allocation7], 4294965248  ;;  %p1814_p13 = pmov %p1813_p8 }
  0x8c   : > { %p1815_p6 = pmov %p1813_p8 }
  0x8d   : > { %1408 = dma.done.wait (%p1814_p13), [#allocation10], 1024  }
  0x8e   : > { %1410 = vsyncadd (%p1815_p6), [#allocation10], 4294966272  ;;  %v1439_v1 = vmov 0   ;;  %v1203_v2 = vld [vmem:[#allocation6 + $0x4] ss:$8 sps:$4 sm:$0xff]   ;;  %v1221_v13 = vld [vmem:[#allocation8 + $0x10] sm:$0xff]   ;;  %v414_v28 = vlaneseq }
  0x8f   : > { %513 = vmatprep.mubr.bf16.mxu0 %v1439_v1  ;;  %1202 = vset.pattern.permute.xlu1 %v1439_v1  ;;  %v1205_v3 = vld [vmem:[#allocation6] ss:$8 sps:$4 sm:$0xff]   ;;  %v1206_v4 = vld [vmem:[#allocation6 + $0x14] ss:$8 sps:$4 sm:$0xff]   ;;  %v1208_v5 = vld [vmem:[#allocation6 + $0x10] ss:$8 sps:$4 sm:$0xff]  }
  0x90   : > { %1201 = vset.pattern.permute.xlu0 %v1439_v1  ;;  %481 = vmatprep.subr.bf16.mxu0 %v1203_v2  ;;  %v1209_v6 = vld [vmem:[#allocation6 + $0x24] ss:$8 sps:$4 sm:$0xff]   ;;  %v1211_v7 = vld [vmem:[#allocation6 + $0x20] ss:$8 sps:$4 sm:$0xff]   ;;  %v1212_v8 = vld [vmem:[#allocation6 + $0x34] ss:$8 sps:$4 sm:$0xff]  }
  0x91   : > { %482 = vmatpush1.bf16.msra.mxu0 %v1205_v3  ;;  %v1217_v9 = vld [vmem:[#allocation8] sm:$0xff]   ;;  %v1214_v10 = vld [vmem:[#allocation6 + $0x30] ss:$8 sps:$4 sm:$0xff]   ;;  %v1219_v11 = vld [vmem:[#allocation8 + $0x8] sm:$0xff]   ;;  %vm474_vm0 = vcmask 523264   ;;  %v415_v29 = vshrl.u32 %v414_v28, 7 }
  0x92   : > { %483 = vmatprep.subr.bf16.mxu0 %v1206_v4  ;;  %1077 = vmatprep.subr.bf16.mxu1 %v1217_v9  ;;  %v1218_v12 = vld [vmem:[#allocation9] sm:$0xff]   ;;  %v1220_v15 = vld [vmem:[#allocation9 + $0x8] sm:$0xff]   ;;  %v1223_v16 = vld [vmem:[#allocation8 + $0x18] sm:$0xff]   ;;  %s396_s25 = scalar_lea.vmem [#allocation11], %s994_s30  ;;  %s1045_s21 = sshll.u32 %s1517_s6, 8 }
  0x93   : > { %1078 = vmatpush3.bf16.msra.mxu1 %v1217_v9  ;;  %v1215_v14 = vld [vmem:[%s1701_s1] sm:$0xff]   ;;  %v1216_v18 = vld [vmem:[%s1701_s1 + $0x8] sm:$0xff]   ;;  %v416_v30 = vsub.s32 0, %v415_v29  ;;  %v420_v32 = vsub.s32 1, %v415_v29  ;;  %s882_s20 = sshll.u32 %s396_s25, 4  ;;  %s1739_s1 = scalar_lea.hbm %s1792_s9, %s1045_s21  ;;  %s1734_s20 = int_to_ptr.vmem [resolvable:$true] %s882_s20 }
  0x94   : > { %1079 = vmatprep.subr.bf16.mxu1 %v1219_v11  ;;  %v1222_v17 = vld [vmem:[#allocation9 + $0x10] sm:$0xff]   ;;  %v1224_v19 = vld [vmem:[#allocation9 + $0x18] sm:$0xff]   ;;  %v1225_v20 = vld [vmem:[#allocation8 + $0x20] sm:$0xff]   ;;  %s869_s30 = scalar_lea.sflag [#allocation5], %s1695_s29  ;;  %s1355_s16 = scalar_lea.vmem %s1734_s20, 256 }
  0x95   : > { %484 = vmatpush1.bf16.msra.mxu0 %v1208_v5  ;;  %v1226_v21 = vld [vmem:[#allocation9 + $0x20] sm:$0xff]   ;;  %v1227_v22 = vld [vmem:[#allocation8 + $0x28] sm:$0xff]   ;;  %v1229_v24 = vld [vmem:[#allocation8 + $0x30] sm:$0xff]   ;;  %p1356_p10 = scmp.ne.s32.totalorder %s1734_s20, %s1355_s16  ;;  %s1440_s6 = smov [#allocation11]  }
  0x96   : > { %485 = vmatprep.subr.bf16.mxu0 %v1209_v6  ;;  %v1228_v23 = vld [vmem:[#allocation9 + $0x28] sm:$0xff]   ;;  %v1230_v25 = vld [vmem:[#allocation9 + $0x30] sm:$0xff]   ;;  %v1231_v26 = vld [vmem:[#allocation8 + $0x38] sm:$0xff]   ;;  %s1359_s18 = sshll.u32 %s1440_s6, 4  ;;  %s1360_s18 = int_to_ptr.vmem [resolvable:$false] %s1359_s18 }
  0x97   : > { %1080 = vmatpush3.bf16.msra.mxu1 %v1219_v11  ;;  %v1232_v27 = vld [vmem:[#allocation9 + $0x38] sm:$0xff]   ;;  %p1357_p3 = pnand %p1356_p10, %p1644_p5  ;;  %s1361_s19 = scalar_lea.vmem %s1360_s18, 512 }
  0x98   : > { %1081 = vmatprep.subr.bf16.mxu1 %v1221_v13  ;;  %v412_v31 = vld [vmem:[%s1785_s2] sm:$0x3]  ;;  %p1362_p12 = scmp.lt.s32.totalorder %s1734_s20, %s1360_s18  ;;  %p1363_p2 = scmp.lt.s32.totalorder %s1361_s19, %s1355_s16 }
  0x99   : > { %486 = vmatpush1.bf16.msra.mxu0 %v1211_v7  ;;  %v417_v33 = vrot.slane %v412_v31, %v416_v30  ;;  %v421_v34 = vrot.slane %v412_v31, %v420_v32  ;;  %v1011_v63 = vld [vmem:[%s1787_s4] ss:$0 sm:$0xff]  ;;  %p1358_p7 = pneg %p1357_p3 }
  0x9a   : > { %487 = vmatprep.subr.bf16.mxu0 %v1212_v8  ;;  %v1020_v7 = vld [vmem:[%s1788_s5] ss:$0 sm:$0xff]  ;;  %p1364_p1 = por %p1363_p2, %p1362_p12 }
  0x9b   : > { %1082 = vmatpush3.bf16.msra.mxu1 %v1221_v13  ;;  %v1022_v30 = vld [vmem:[%s1791_s8] ss:$0 sm:$0xff] }
  0x9c   : > { %1083 = vmatprep.subr.bf16.mxu1 %v1223_v16  ;;  %p1365_p4 = pnand %p1364_p1, %p1358_p7 }
  0x9d   : > { %488 = vmatpush1.bf16.msra.mxu0 %v1214_v10 }
  0x9e   : > { %1097 = vmatprep.subr.bf16.mxu0 %v1218_v12 }
  0x9f   : > { %1084 = vmatpush3.bf16.msra.mxu1 %v1223_v16 }
  0xa0   : > { %1009 = vmatmul.mubr.msk.bf16.vlgmr.msra.gmra.mrb[0].mxu0 %vm474_vm0, %v1215_v14  ;;  %1085 = vmatprep.subr.bf16.mxu1 %v1225_v20 }
  0xa1   : > { %523 = vmatprep.mubr.bf16.mxu0 %v1439_v1  ;;  %1098 = vmatpush3.bf16.msra.mxu0 %v1218_v12 }
  0xa2   : > { %1099 = vmatprep.subr.bf16.mxu0 %v1220_v15 }
  0xa3   : > { %1086 = vmatpush3.bf16.msra.mxu1 %v1225_v20 }
  0xa4   : > { %1087 = vmatprep.subr.bf16.mxu1 %v1227_v22 }
  0xa5   : > { %1100 = vmatpush3.bf16.msra.mxu0 %v1220_v15 }
  0xa6   : > { %1101 = vmatprep.subr.bf16.mxu0 %v1222_v17 }
  0xa7   : > { %1088 = vmatpush3.bf16.msra.mxu1 %v1227_v22 }
  0xa8   : > { %1010 = vmatmul.mubr.msk.bf16.gmra.mrb[4].mxu0 %vm474_vm0, %v1216_v18  ;;  %1089 = vmatprep.subr.bf16.mxu1 %v1229_v24 }
  0xa9   : > { %1102 = vmatpush3.bf16.msra.mxu0 %v1222_v17 }
  0xaa   : > { %1103 = vmatprep.subr.bf16.mxu0 %v1224_v19 }
  0xab   : > { %1090 = vmatpush3.bf16.msra.mxu1 %v1229_v24 }
  0xac   : > { %1091 = vmatprep.subr.bf16.mxu1 %v1231_v26 }
  0xad   : > { %1104 = vmatpush3.bf16.msra.mxu0 %v1224_v19 }
  0xae   : > { %1105 = vmatprep.subr.bf16.mxu0 %v1226_v21 }
  0xaf   : > { %1092 = vmatpush3.bf16.msra.mxu1 %v1231_v26 }
  0xb1   : > { %1106 = vmatpush3.bf16.msra.mxu0 %v1226_v21  ;;  %v1021_v21 = vld [vmem:[#allocation2] ss:$0 sm:$0xff] }
  0xb2   : > { %1107 = vmatprep.subr.bf16.mxu0 %v1228_v23 }
  0xb5   : > { %1108 = vmatpush3.bf16.msra.mxu0 %v1228_v23 }
  0xb6   : > { %1109 = vmatprep.subr.bf16.mxu0 %v1230_v25 }
  0xb9   : > { %1110 = vmatpush3.bf16.msra.mxu0 %v1230_v25 }
  0xba   : > { %1111 = vmatprep.subr.bf16.mxu0 %v1232_v27 }
  0xbd   : > { %1112 = vmatpush3.bf16.msra.mxu0 %v1232_v27 }
 0x173   : > { %v515_v35 = vpop.f32.mrb[0].mxu0 }
 0x174   : > { %v516_v36 = vadd.f32 %v515_v35, %v417_v33  ;;  %v517_v37 = vpop.f32.mrb[1].mxu0 }
 0x175   : > { %v518_v38 = vadd.f32 %v517_v37, %v421_v34  ;;  %v519_v39 = vpop.f32.mrb[2].mxu0 }
 0x176   : > { %v520_v40 = vadd.f32 %v519_v39, %v417_v33  ;;  %v521_v41 = vpop.f32.mrb[3].mxu0  ;;  %v534_v43 = vmax.f32 %v516_v36, 0.0 }
 0x177   : > { %v522_v42 = vadd.f32 %v521_v41, %v421_v34  ;;  %v535_v45 = vmax.f32 %v518_v38, 0.0 }
 0x178   : > { %v536_v44 = vmax.f32 %v520_v40, 0.0 }
 0x179   : > { %v537_v46 = vmax.f32 %v522_v42, 0.0 }
 0x17a   : > { %v542_v47 = vpack.c.bf16 %v536_v44, %v534_v43 }
 0x17b   : > { %v544_v48 = vpack.c.bf16 %v537_v46, %v535_v45  ;;  %v525_v49 = vpop.f32.mrb[4].mxu0 }
 0x17c   : > { %v526_v50 = vadd.f32 %v525_v49, %v417_v33  ;;  %v527_v51 = vpop.f32.mrb[5].mxu0  ;;  %1093 = vmatprep.mubr.bf16.mxu1 %v542_v47 }
 0x17d   : > { %v528_v52 = vadd.f32 %v527_v51, %v421_v34  ;;  %v529_v53 = vpop.f32.mrb[6].mxu0  ;;  %1113 = vmatprep.mubr.bf16.mxu0 %v544_v48 }
 0x17e   : > { %v530_v54 = vadd.f32 %v529_v53, %v417_v33  ;;  %v531_v55 = vpop.f32.mrb[7].mxu0  ;;  %v538_v57 = vmax.f32 %v526_v50, 0.0 }
 0x17f   : > { %v532_v56 = vadd.f32 %v531_v55, %v421_v34  ;;  %v539_v59 = vmax.f32 %v528_v52, 0.0 }
 0x180   : > { %v540_v58 = vmax.f32 %v530_v54, 0.0 }
 0x181   : > { %v541_v60 = vmax.f32 %v532_v56, 0.0 }
 0x182   : > { %v543_v61 = vpack.c.bf16 %v540_v58, %v538_v57 }
 0x183   : > { %v545_v62 = vpack.c.bf16 %v541_v60, %v539_v59 }
 0x184   : > { %1094 = vmatmul.mubr.bf16.vlgmr.msra.gmra.mrb[0].mxu1 %v543_v61 }
 0x185   : > { %1114 = vmatmul.mubr.bf16.vlgmr.msra.gmra.mrb[8].mxu0 %v545_v62 }
 0x257   : > { %v1095_v0 = vpop.f32.mrb[0].mxu1 }
 0x258   : > { %v660_v1 = vadd.f32 %v1095_v0, %v1011_v63  ;;  %v651_v2 = vpop.f32.mrb[1].mxu1  ;;  %v1115_v3 = vpop.f32.mrb[8].mxu0 }
 0x259   : > { %v652_v4 = vadd.f32 %v1011_v63, %v651_v2  ;;  %v1096_v5 = vpop.f32.mrb[2].mxu1  ;;  %v805_v6 = vpop.f32.mrb[9].mxu0  ;;  %v814_v33 = vadd.f32 %v1115_v3, %v1022_v30 }
 0x25a   : > { %v668_v8 = vmax.f32 %v660_v1, 0.0  ;;  %v663_v9 = vadd.f32 %v1096_v5, %v1011_v63  ;;  %v654_v10 = vpop.f32.mrb[3].mxu1  ;;  %v1116_v11 = vpop.f32.mrb[10].mxu0  ;;  %v806_v31 = vadd.f32 %v1022_v30, %v805_v6 }
 0x25b   : > { %v666_v12 = vmax.f32 %v652_v4, 0.0  ;;  %v655_v13 = vadd.f32 %v1011_v63, %v654_v10  ;;  %v808_v14 = vpop.f32.mrb[11].mxu0  ;;  %v817_v34 = vadd.f32 %v1116_v11, %v1022_v30 }
 0x25c   : > { %v669_v15 = vmax.f32 %v663_v9, 0.0  ;;  %v679_v16 = vmul.f32 %v1020_v7, %v668_v8  ;;  %v809_v32 = vadd.f32 %v1022_v30, %v808_v14  ;;  %1233 = vtanh.f32 %v806_v31 }
 0x25d   : > { %v667_v17 = vmax.f32 %v655_v13, 0.0  ;;  %v677_v18 = vmul.f32 %v1020_v7, %v666_v12 }
 0x25e   : > { %685 = vadd.xlane.f32.xlu1 %v679_v16  ;;  %v680_v19 = vmul.f32 %v1020_v7, %v669_v15  ;;  %1235 = vtanh.f32 %v809_v32 }
 0x25f   : > { %681 = vadd.xlane.f32.xlu0 %v677_v18  ;;  %v678_v20 = vmul.f32 %v1020_v7, %v667_v17  ;;  %1237 = vtanh.f32 %v814_v33 }
 0x260   : > { %1239 = vtanh.f32 %v817_v34 }
 0x262   : > { %687 = vadd.xlane.f32.xlu1 %v680_v19 }
 0x263   : > { %683 = vadd.xlane.f32.xlu0 %v678_v20 }
 0x266   : > { %v1234_v37 = vpop.eup %1233 }
 0x268   : > { %v1236_v38 = vpop.eup %1235 }
 0x269   : > { %v1238_v42 = vpop.eup %1237 }
 0x26a   : > { %v1240_v44 = vpop.eup %1239 }
 0x2eb   : > { %v686_v22 = vpop.xlane.xlu1 %685 }
 0x2ec   : > { %v698_v23 = vadd.f32 %v1021_v21, %v686_v22  ;;  %v682_v24 = vpop.xlane.xlu0 %681 }
 0x2ed   : > { %v696_v25 = vadd.f32 %v1021_v21, %v682_v24 }
 0x2ee   : > { %836 = vperm.xlu1 %1202, %v698_v23  }
 0x2ef   : > { %826 = vperm.xlu0 %1201, %v696_v25   ;;  %v688_v28 = vpop.xlane.xlu1 %687 }
 0x2f0   : > { %v684_v26 = vpop.xlane.xlu0 %683  ;;  %v699_v29 = vadd.f32 %v1021_v21, %v688_v28 }
 0x2f1   : > { %v697_v27 = vadd.f32 %v1021_v21, %v684_v26 }
 0x2f3   : > { %831 = vperm.xlu1 %1202, %v697_v27  }
 0x2f7   : > { %841 = vperm.xlu1 %1202, %v699_v29  }
 0x36d   : > { %v837_v35 = vpop.permute.xlu1 %836 }
 0x36e   : > { %v827_v36 = vpop.permute.xlu0 %826  ;;  %v846_v46 = vadd.f32 %v1238_v42, %v837_v35 }
 0x36f   : > { %v844_v40 = vadd.f32 %v1234_v37, %v827_v36 }
 0x372   : > { %v832_v39 = vpop.permute.xlu1 %831 }
 0x373   : > { %v845_v41 = vadd.f32 %v1236_v38, %v832_v39 }
 0x375   : > { %v1049_v43 = vpack.c.bf16 %v845_v41, %v844_v40 }
 0x376   : > { %v842_v45 = vpop.permute.xlu1 %841 }
 0x377   : > { %1050 = vst [vmem:[%s396_s25] sm:$0xff] %v1049_v43   ;;  %v847_v47 = vadd.f32 %v1240_v44, %v842_v45 }
 0x379   : > { %v1054_v48 = vpack.c.bf16 %v847_v47, %v846_v46 }
 0x37b   : > { %1056 = vst [vmem:[%s396_s25 + $0x8] sm:$0xff] %v1054_v48  }
 0x37c   : > { %1368 = shalt.err (!%p1365_p4)
}
 0x37d   : > { %s1369_s17 = scalar_lea.hbm %s1739_s1, 256  ;;  %s1373_s11 = scalar_lea.hbm %s1792_s9, 512 }
 0x37e   : > { %p1370_p9 = scmp.ne.s32.totalorder %s1739_s1, %s1369_s17  ;;  %p1374_p8 = scmp.lt.u32.totalorder %s1739_s1, %s1792_s9 }
 0x37f   : > { %p1375_p13 = scmp.lt.u32.totalorder %s1373_s11, %s1369_s17  ;;  %p1377_p10 = scmp.lt.u32.totalorder %s1369_s17, %s1739_s1 }
 0x380   : > { %p1371_p0 = pnand %p1370_p9, %p1644_p5 }
 0x381   : > { %p1376_p6 = por %p1375_p13, %p1374_p8 }
 0x382   : > { %p1372_p11 = pneg %p1371_p0 }
 0x383   : > { %p1378_p3 = por %p1377_p10, %p1376_p6 }
 0x385   : > { %p1379_p7 = pnand %p1378_p3, %p1372_p11 }
 0x387   : > { %1382 = shalt.err (!%p1379_p7)
}
 0x388   : > { %s1441_s21 = smov 64   ;;  %s1442_s28 = smov 4  }
 0x389   : > { %1131 = dma.vmem_to_hbm [thread:$0]  (%p1644_p5), %s1734_s20, 256, %s1739_s1, %s869_s30, %s1441_s21, %s1441_s21, %s1442_s28  }
 0x38a PF: > { %s1816_s10 = sld [smem:[#allocation16_spill]]  ;;  %s1817_s16 = sld [smem:[#allocation17_spill]] }
 0x38b   : > { %p1819_p2 = scmp.ge.s32.totalorder %s1429_s14, 2 }
 0x390   : > { %s897_s6 = sand.u32 1, %s1816_s10   ;;  %p1818_p12 = scmp.ne.s32.totalorder %s1817_s16, 0 }
 0x391   : > { %s898_s18 = scalar_lea.sflag [#allocation5], %s897_s6 }
 0x392   : > { %p1148_p1 = pnand %p1819_p2, %p1818_p12 }
 0x394   : > { %1412 = dma.done.wait (!%p1148_p1), %s898_s18, 256  }
 0x395   : > { %1414 = vsyncadd (!%p1148_p1), %s898_s18, 4294967040  ;;  %p26_p4 = scmp.ge.s32.totalorder %s1609_s27, 4   ;;  %s1820_s11 = smov %s1421_s12 }
 0x396   : > { %s1821_s12 = smov %s1425_s13  ;;  %s1822_s13 = smov %s1640_s22 }
 0x397   : > { %s1823_s14 = smov %s1609_s27  ;;  %28 = sbr.rel (!%p26_p4) target bundleno = 10 (0xa), region = 113 }
 0x39e   :  { %903 = vsyncpa [#allocation4], 1 }
 0x39f   :  { %905 = vsyncpa [#allocation4 + $0x1], 1 }
 0x3a0   :  { %906 = vsyncpa [#allocation7], 1 }
 0x3a1   :  { %907 = vsyncpa [#allocation10], 1 }
 0x3a2   :  { %908 = vsyncpa [#allocation5], 1 }
 0x3a3   :  { %910 = vsyncpa [#allocation5 + $0x1], 1 }

</bundles_post_ra>
